<compile_context>
chip_gen: v7x
topology: tpu7x:2x2x1
jax: 0.10.0
libtpu: 0.0.40
codegen_flags: <defaults>
</compile_context>

<pallas_src>
import jax
import jax.numpy as jnp
from jax import lax
from jax.experimental import pallas as pl
from jax.experimental.pallas import tpu as pltpu


# -----------------------------------------------------------------------------
# tile-size helpers
# -----------------------------------------------------------------------------
def _pick_tile(dim, preferred, align):
    """Largest multiple of `align` that divides `dim` and is <= `preferred`,
    falling back to the full extent (full-extent blocks are always legal)."""
    if dim <= preferred:
        return dim
    t = (preferred // align) * align
    while t >= align:
        if dim % t == 0:
            return t
        t -= align
    return dim


def _pick_hidden_tile(hidden_size, preferred=512):
    """Lane-aligned hidden tile; when hidden_size >= 256, cap the tile so the
    parallel hidden axis has >= 2 blocks (v7x megacore: both TCs get work)."""
    if hidden_size >= 256:
        half = ((hidden_size // 2) // 128) * 128
        preferred = min(preferred, max(128, half))
    return _pick_tile(hidden_size, preferred, 128)


def _maybe_vmem_limit(byte_estimate, scoped_default=32 << 20):
    """Return an explicit vmem_limit_bytes only when the double-buffered
    footprint exceeds the scoped default (v5e: 16 MiB, v6e/v7x: 32 MiB)."""
    if byte_estimate <= scoped_default:
        return None
    return min(int(byte_estimate * 3 // 2), 100 << 20)


# -----------------------------------------------------------------------------
# single-step IndRNN cell kernels (tiled matmul + fused elementwise epilogue)
# -----------------------------------------------------------------------------
def _indrnn_cell_kernel_f32out(x_ref, h_ref, w_ref, whh_ref, b_ref, out_ref):
    """f32 output is resident across the k axis; accumulate directly into it
    (no acc scratch, saves tb*tn*4 bytes of VMEM and the final copy)."""
    k = pl.program_id(2)

    @pl.when(k == 0)
    def _():
        out_ref[...] = jnp.zeros_like(out_ref)

    out_ref[...] += jnp.dot(x_ref[...], w_ref[...],
                            preferred_element_type=jnp.float32)

    @pl.when(k == pl.num_programs(2) - 1)
    def _():
        pre = (out_ref[...]
               + whh_ref[...].astype(jnp.float32) * h_ref[...].astype(jnp.float32)
               + b_ref[...].astype(jnp.float32))
        out_ref[...] = jnp.maximum(pre, 0.0)


def _indrnn_cell_kernel_acc(x_ref, h_ref, w_ref, whh_ref, b_ref, out_ref, acc_ref):
    """Low-precision outputs keep a dedicated f32 accumulator scratch."""
    k = pl.program_id(2)

    @pl.when(k == 0)
    def _():
        acc_ref[...] = jnp.zeros_like(acc_ref)

    acc_ref[...] += jnp.dot(x_ref[...], w_ref[...],
                            preferred_element_type=jnp.float32)

    @pl.when(k == pl.num_programs(2) - 1)
    def _():
        pre = (acc_ref[...]
               + whh_ref[...].astype(jnp.float32) * h_ref[...].astype(jnp.float32)
               + b_ref[...].astype(jnp.float32))
        out_ref[...] = jnp.maximum(pre, 0.0).astype(out_ref.dtype)


def indrnn_cell_forward(x, hidden, weight_ih, weight_hh, bias_ih,
                        *, use_bf16_matmul=False):
    """One IndRNNCell step: returns (h, h) like the PyTorch module.

    Perf note: with a small batch (M ~ 8) the MXU is necessarily starved; use
    indrnn_sequence_forward for the sequence workload (it flattens TT*B into
    the matmul M dimension)."""
    batch, input_size = x.shape
    hidden_size = hidden.shape[1]

    wih_t = weight_ih.T  # (input_size, hidden_size); transposed once
    if use_bf16_matmul:  # v6e/v7x native bf16 MXU; accumulate + epilogue stay f32
        x = x.astype(jnp.bfloat16)
        wih_t = wih_t.astype(jnp.bfloat16)

    sub_align = 16 if use_bf16_matmul else 8   # bf16 packs (16,128) per vreg
    tb = _pick_tile(batch, 256, sub_align)
    tn = _pick_hidden_tile(hidden_size)
    tk = _pick_tile(input_size, 512, 128)
    grid = (batch // tb, hidden_size // tn, input_size // tk)

    f32_out = hidden.dtype == jnp.float32
    kernel = _indrnn_cell_kernel_f32out if f32_out else _indrnn_cell_kernel_acc
    scratch = [] if f32_out else [pltpu.VMEM((tb, tn), jnp.float32)]

    out = pl.pallas_call(
        kernel,
        out_shape=jax.ShapeDtypeStruct((batch, hidden_size), hidden.dtype),
        grid_spec=pltpu.PrefetchScalarGridSpec(
            num_scalar_prefetch=0,
            grid=grid,
            in_specs=[
                pl.BlockSpec((tb, tk), lambda i, j, k: (i, k)),   # x
                pl.BlockSpec((tb, tn), lambda i, j, k: (i, j)),   # hidden
                pl.BlockSpec((tk, tn), lambda i, j, k: (k, j)),   # w_ih^T
                pl.BlockSpec((1, tn), lambda i, j, k: (0, j)),    # w_hh
                pl.BlockSpec((1, tn), lambda i, j, k: (0, j)),    # b_ih
            ],
            out_specs=pl.BlockSpec((tb, tn), lambda i, j, k: (i, j)),
            scratch_shapes=scratch,
        ),
        compiler_params=pltpu.CompilerParams(
            dimension_semantics=("parallel", "parallel", "arbitrary")),
    )(x, hidden, wih_t, weight_hh, bias_ih)
    return out, out


# -----------------------------------------------------------------------------
# fused-sequence kernel: projection + time-chunked recurrence in ONE pass
# -----------------------------------------------------------------------------
def _indrnn_fused_seq_kernel(x_ref, wih_ref, h0_ref, whh_ref, b_ref,
                             out_ref, h_scr, pre_scr):
    """Per grid step: one (TT*B, I) x (I, tnr) MXU matmul, then TT sequential
    recurrence steps.  Hidden state h is carried as a fori_loop value (one
    VMEM store per chunk) and persists in h_scr across time chunks."""
    c = pl.program_id(1)                      # time-chunk index (inner axis)
    tt, bsz, isz = x_ref.shape
    tnr = out_ref.shape[2]

    @pl.when(c == 0)
    def _():
        h_scr[...] = h0_ref[...].astype(jnp.float32)

    # Fused input projection for the whole chunk (time-independent -> one dot).
    x_flat = x_ref[...].reshape(tt * bsz, isz)
    pre = jnp.dot(x_flat, wih_ref[...], preferred_element_type=jnp.float32)
    pre_scr[...] = pre.reshape(tt, bsz, tnr) + b_ref[...].astype(jnp.float32)

    # Hoisted recurrent-weight broadcast (JAX does not CSE broadcast_in_dim).
    whh = jnp.broadcast_to(whh_ref[...].astype(jnp.float32), (bsz, tnr))

    def step(t, h):
        h_new = jnp.maximum(pre_scr[t] + whh * h, 0.0)
        out_ref[t] = h_new.astype(out_ref.dtype)
        return h_new

    h_scr[...] = lax.fori_loop(0, tt, step, h_scr[...], unroll=(tt <= 16))


def indrnn_sequence_forward(x_seq, h0, weight_ih, weight_hh, bias_ih,
                            *, use_bf16_matmul=False, time_chunk=32):
    """Apply the IndRNN cell over a (T, B, I) sequence in a single pallas_call.

    Returns (outputs, h_T) with outputs of shape (T, B, H); outputs[t] equals
    the hidden state the PyTorch cell would produce at step t."""
    seq_len, batch, input_size = x_seq.shape
    hidden_size = h0.shape[1]

    wih_t = weight_ih.T                      # (I, H), transposed once
    if use_bf16_matmul:                      # halves dominant x/W read bytes
        x_seq = x_seq.astype(jnp.bfloat16)
        wih_t = wih_t.astype(jnp.bfloat16)

    tt = _pick_tile(seq_len, time_chunk, 1)          # TT timesteps per chunk
    tnr = _pick_hidden_tile(hidden_size)             # lane-aligned hidden tile
    grid = (hidden_size // tnr, seq_len // tt)       # (parallel, sequential)

    in_bytes = 2 if use_bf16_matmul else 4
    out_bytes = jnp.dtype(h0.dtype).itemsize
    footprint = (2 * (tt * batch * input_size * in_bytes          # x (dbl-buf)
                      + input_size * tnr * in_bytes               # wih slice
                      + (batch + 2) * tnr * 4                     # h0/whh/bias
                      + tt * batch * tnr * out_bytes)             # out (dbl-buf)
                 + (batch * tnr + tt * batch * tnr) * 4)          # scratches
    vmem_limit = _maybe_vmem_limit(footprint)

    outputs = pl.pallas_call(
        _indrnn_fused_seq_kernel,
        out_shape=jax.ShapeDtypeStruct((seq_len, batch, hidden_size), h0.dtype),
        grid_spec=pltpu.PrefetchScalarGridSpec(
            num_scalar_prefetch=0,
            grid=grid,
            in_specs=[
                pl.BlockSpec((tt, batch, input_size),
                             lambda j, c: (c, 0, 0)),               # x chunk
                pl.BlockSpec((input_size, tnr),
                             lambda j, c: (0, j)),                  # w_ih^T (t-resident)
                pl.BlockSpec((batch, tnr), lambda j, c: (0, j)),    # h0
                pl.BlockSpec((1, tnr), lambda j, c: (0, j)),        # w_hh
                pl.BlockSpec((1, tnr), lambda j, c: (0, j)),        # b_ih
            ],
            out_specs=pl.BlockSpec((tt, batch, tnr),
                                   lambda j, c: (c, 0, j)),
            scratch_shapes=[
                pltpu.VMEM((batch, tnr), jnp.float32),          # carried hidden
                pltpu.VMEM((tt, batch, tnr), jnp.float32),      # chunk pre-activation
            ],
        ),
        compiler_params=pltpu.CompilerParams(
            dimension_semantics=("parallel", "arbitrary"),
            vmem_limit_bytes=vmem_limit),
    )(x_seq, wih_t, h0, weight_hh, bias_ih)
    return outputs, outputs[-1]


# -----------------------------------------------------------------------------
# parameter init mirroring IndRNNCell.__init__ / reset_parameters / clip_weight
# (init_ih='norm', bias zeroed, hidden_min_abs=0, hidden_max_abs=2)
# -----------------------------------------------------------------------------
def init_params(key, input_size, hidden_size,
                hidden_min_abs=0.0, hidden_max_abs=2.0):
    k_ih, k_hh = jax.random.split(key)
    weight_ih = 0.1 * jax.random.normal(k_ih, (hidden_size, input_size),
                                        dtype=jnp.float32)
    weight_hh = jax.random.normal(k_hh, (1, hidden_size), dtype=jnp.float32)
    if hidden_min_abs:
        abs_k = jnp.maximum(jnp.abs(weight_hh), hidden_min_abs)
        weight_hh = jnp.sign(weight_hh) * abs_k
    if hidden_max_abs:
        weight_hh = jnp.clip(weight_hh, -hidden_max_abs, hidden_max_abs)
    bias_ih = jnp.zeros((1, hidden_size), dtype=jnp.float32)
    return weight_ih, weight_hh, bias_ih
    # TODO(synk): gradient_clip backward hooks are training-time only; no
    # forward-pass equivalent needed.


if __name__ == "__main__":
    batch = 8
    input_size = 64
    hidden_size = 256     # two 128-lane hidden tiles -> exercises parallel axis
    seq_len = 16

    key = jax.random.PRNGKey(0)
    k_x, k_h, k_p, k_seq = jax.random.split(key, 4)

    weight_ih, weight_hh, bias_ih = init_params(k_p, input_size, hidden_size)

    # ---- single-cell forward (matches IndRNNCell.forward) ----
    x = jax.random.normal(k_x, (batch, input_size), dtype=jnp.float32)
    hidden = jax.random.normal(k_h, (batch, hidden_size), dtype=jnp.float32)

    out, h = indrnn_cell_forward(x, hidden, weight_ih, weight_hh, bias_ih)
    jax.block_until_ready(out)

    ref = jnp.maximum(x @ weight_ih.T + weight_hh * hidden + bias_ih, 0.0)
    assert jnp.allclose(out, ref, atol=1e-4, rtol=1e-4), "cell mismatch vs reference"

    # ---- fused sequence forward (single pallas_call, time-chunked) ----
    x_seq = jax.random.normal(k_seq, (seq_len, batch, input_size),
                              dtype=jnp.float32)
    # time_chunk=8 -> 2 time chunks: exercises the VMEM-resident h carry.
    outs, h_last = indrnn_sequence_forward(x_seq, hidden, weight_ih,
                                           weight_hh, bias_ih, time_chunk=8)
    jax.block_until_ready(outs)

    def step(h_prev, x_t):
        h_t = jnp.maximum(x_t @ weight_ih.T + weight_hh * h_prev + bias_ih, 0.0)
        return h_t, h_t

    _, ref_seq = jax.lax.scan(step, hidden, x_seq)
    assert jnp.allclose(outs, ref_seq, atol=1e-4, rtol=1e-4), \
        "sequence mismatch vs scan reference"
    assert jnp.allclose(h_last, ref_seq[-1], atol=1e-4, rtol=1e-4), \
        "final hidden mismatch"

    # NOTE: use_bf16_matmul=True is the recommended perf default on v6e/v7x but
    # intentionally not asserted against the 1e-4 f32 reference here.

    print("KERNEL_OK")
</pallas_src>

<mosaic_0001>
module attributes {stable_mosaic.version = 11 : i64} {
  func.func @_indrnn_cell_kernel_f32out(%arg0: i32, %arg1: i32, %arg2: i32, %arg3: memref<8x64xf32, #tpu.memory_space<vmem>>, %arg4: memref<8x128xf32, #tpu.memory_space<vmem>>, %arg5: memref<64x128xf32, #tpu.memory_space<vmem>>, %arg6: memref<1x128xf32, #tpu.memory_space<vmem>>, %arg7: memref<1x128xf32, #tpu.memory_space<vmem>>, %arg8: memref<8x128xf32, #tpu.memory_space<vmem>>) attributes {dimension_semantics = [#tpu.dimension_semantics<parallel>, #tpu.dimension_semantics<parallel>, #tpu.dimension_semantics<arbitrary>], iteration_bounds = array<i64: 1, 2, 1>, scalar_prefetch = 0 : i64, scratch_operands = 0 : i64, tpu.core_type = #tpu.core_type<tc>, window_params = [{transform_indices = @transform_0, window_bounds = array<i64: 8, 64>}, {transform_indices = @transform_1, window_bounds = array<i64: 8, 128>}, {transform_indices = @transform_2, window_bounds = array<i64: 64, 128>}, {transform_indices = @transform_3, window_bounds = array<i64: 1, 128>}, {transform_indices = @transform_4, window_bounds = array<i64: 1, 128>}, {transform_indices = @transform_5, window_bounds = array<i64: 8, 128>}]} {
    %c0_i32 = arith.constant 0 : i32
    %0 = arith.cmpi eq, %arg2, %c0_i32 : i32
    %1 = arith.extui %0 : i1 to i32
    %c0_i32_0 = arith.constant 0 : i32
    %2 = arith.cmpi ne, %1, %c0_i32_0 : i32
    scf.if %2 {
      %cst_10 = arith.constant 0.000000e+00 : f32
      %12 = vector.broadcast %cst_10 : f32 to vector<8x128xf32>
      %c0_11 = arith.constant 0 : index
      %c0_12 = arith.constant 0 : index
      %13 = vector.load %arg8[%c0_11, %c0_12] : memref<8x128xf32, #tpu.memory_space<vmem>>, vector<8x128xf32>
      tpu.vector_store %arg8[%c0_11, %c0_12], %12 {strides = array<i32>} : memref<8x128xf32, #tpu.memory_space<vmem>>, vector<8x128xf32>,
    } else {
    }
    %c0 = arith.constant 0 : index
    %c0_1 = arith.constant 0 : index
    %3 = vector.load %arg8[%c0, %c0_1] : memref<8x128xf32, #tpu.memory_space<vmem>>, vector<8x128xf32>
    %c0_2 = arith.constant 0 : index
    %c0_3 = arith.constant 0 : index
    %4 = vector.load %arg3[%c0_2, %c0_3] : memref<8x64xf32, #tpu.memory_space<vmem>>, vector<8x64xf32>
    %c0_4 = arith.constant 0 : index
    %c0_5 = arith.constant 0 : index
    %5 = vector.load %arg5[%c0_4, %c0_5] : memref<64x128xf32, #tpu.memory_space<vmem>>, vector<64x128xf32>
    %cst = arith.constant dense<0.000000e+00> : vector<8x128xf32>
    %6 = tpu.matmul %4, %5, %cst {dimension_numbers = #tpu.dot_dimension_numbers<[1], [0], [0], [1], [0, 0, 1, 1], [], []>} : vector<8x64xf32>, vector<64x128xf32>, vector<8x128xf32> -> vector<8x128xf32>
    %7 = arith.addf %3, %6 : vector<8x128xf32>
    %c0_6 = arith.constant 0 : index
    %c0_7 = arith.constant 0 : index
    %8 = vector.load %arg8[%c0_6, %c0_7] : memref<8x128xf32, #tpu.memory_space<vmem>>, vector<8x128xf32>
    tpu.vector_store %arg8[%c0_6, %c0_7], %7 {strides = array<i32>} : memref<8x128xf32, #tpu.memory_space<vmem>>, vector<8x128xf32>,
    %c0_i32_8 = arith.constant 0 : i32
    %9 = arith.cmpi eq, %arg2, %c0_i32_8 : i32
    %10 = arith.extui %9 : i1 to i32
    %c0_i32_9 = arith.constant 0 : i32
    %11 = arith.cmpi ne, %10, %c0_i32_9 : i32
    scf.if %11 {
      %c0_10 = arith.constant 0 : index
      %c0_11 = arith.constant 0 : index
      %12 = vector.load %arg8[%c0_10, %c0_11] : memref<8x128xf32, #tpu.memory_space<vmem>>, vector<8x128xf32>
      %c0_12 = arith.constant 0 : index
      %c0_13 = arith.constant 0 : index
      %13 = vector.load %arg6[%c0_12, %c0_13] : memref<1x128xf32, #tpu.memory_space<vmem>>, vector<1x128xf32>
      %c0_14 = arith.constant 0 : index
      %c0_15 = arith.constant 0 : index
      %14 = vector.load %arg4[%c0_14, %c0_15] : memref<8x128xf32, #tpu.memory_space<vmem>>, vector<8x128xf32>
      %15 = vector.broadcast %13 : vector<1x128xf32> to vector<8x128xf32>
      %16 = arith.mulf %15, %14 : vector<8x128xf32>
      %17 = arith.addf %12, %16 : vector<8x128xf32>
      %c0_16 = arith.constant 0 : index
      %c0_17 = arith.constant 0 : index
      %18 = vector.load %arg7[%c0_16, %c0_17] : memref<1x128xf32, #tpu.memory_space<vmem>>, vector<1x128xf32>
      %19 = vector.broadcast %18 : vector<1x128xf32> to vector<8x128xf32>
      %20 = arith.addf %17, %19 : vector<8x128xf32>
      %cst_18 = arith.constant 0.000000e+00 : f32
      %21 = vector.broadcast %cst_18 : f32 to vector<8x128xf32>
      %22 = arith.maximumf %20, %21 : vector<8x128xf32>
      %c0_19 = arith.constant 0 : index
      %c0_20 = arith.constant 0 : index
      %23 = vector.load %arg8[%c0_19, %c0_20] : memref<8x128xf32, #tpu.memory_space<vmem>>, vector<8x128xf32>
      tpu.vector_store %arg8[%c0_19, %c0_20], %22 {strides = array<i32>} : memref<8x128xf32, #tpu.memory_space<vmem>>, vector<8x128xf32>,
    } else {
    }
    return
  }
  func.func @transform_0(%arg0: i32, %arg1: i32, %arg2: i32) -> (i32, i32) {
    %c0_i32 = arith.constant 0 : i32
    return %arg0, %arg2 : i32, i32
  }
  func.func @transform_1(%arg0: i32, %arg1: i32, %arg2: i32) -> (i32, i32) {
    %c0_i32 = arith.constant 0 : i32
    return %arg0, %arg1 : i32, i32
  }
  func.func @transform_2(%arg0: i32, %arg1: i32, %arg2: i32) -> (i32, i32) {
    %c0_i32 = arith.constant 0 : i32
    return %arg2, %arg1 : i32, i32
  }
  func.func @transform_3(%arg0: i32, %arg1: i32, %arg2: i32) -> (i32, i32) {
    %c0_i32 = arith.constant 0 : i32
    %c0_i32_0 = arith.constant 0 : i32
    return %c0_i32, %arg1 : i32, i32
  }
  func.func @transform_4(%arg0: i32, %arg1: i32, %arg2: i32) -> (i32, i32) {
    %c0_i32 = arith.constant 0 : i32
    %c0_i32_0 = arith.constant 0 : i32
    return %c0_i32, %arg1 : i32, i32
  }
  func.func @transform_5(%arg0: i32, %arg1: i32, %arg2: i32) -> (i32, i32) {
    %c0_i32 = arith.constant 0 : i32
    return %arg0, %arg1 : i32, i32
  }
}

</mosaic_0001>

<bundles_post_ra>
// kernel: tpu_custom_call.1
= control target key start
LH: loop header
LB: loop body
LE: loop exit
PB: predicated region body
PF: predicated region fallthrough
CT: control target
= control target key end

     0   :  { %s1262_s0 = inlined_call_operand.hbm [shape: f32[8,64], index: 0, kind: input, shape index: {}]   ;;  %s1263_s1 = inlined_call_operand.hbm [shape: f32[8,256], index: 1, kind: input, shape index: {}]   ;;  %s1264_s2 = inlined_call_operand.hbm [shape: f32[64,256], index: 2, kind: input, shape index: {}]   ;;  %s1265_s3 = inlined_call_operand.vmem [shape: f32[1,256], index: 3, kind: input, shape index: {}]   ;;  %s1266_s4 = inlined_call_operand.vmem [shape: f32[1,256], index: 4, kind: input, shape index: {}]   ;;  %s1267_s5 = inlined_call_operand.hbm [shape: f32[8,256], index: 5, kind: output, shape index: {}]  }
   0x1   :  { %1272 = sst [smem:[#allocation12_spill]] %s1263_s1 }
   0x2   :  { %1273 = sst [smem:[#allocation13_spill]] %s1264_s2 }
   0x3   :  { %10 = vsyncpa [#allocation3], 0 }
   0x4   :  { %11 = vsyncpa [#allocation6], 0 }
   0x5   :  { %13 = vsyncpa [#allocation6 + $0x1], 0 }
   0x6   :  { %14 = vsyncpa [#allocation4], 0 }
   0x7   :  { %16 = vsyncpa [#allocation4 + $0x1], 0  ;;  %s990_s18 = smov 0   ;;  %s992_s19 = smov 0  }
   0x8   :  { %s994_s20 = smov 0   ;;  %s996_s21 = smov 0  }
   0x9   :  { %s998_s22 = smov 0   ;;  %s1000_s23 = smov 0  }
   0xa LB: > { %s37_s24 = sadd.s32 1, %s944_s22  ;;  %s78_s25 = sadd.s32 1, %s936_s20  ;;  %s948_s23 = sphi %s1000_s23, %s22_s23   ;;  %s944_s22 = sphi %s998_s22, %s1295_s22   ;;  %s940_s21 = sphi %s996_s21, %s1294_s21   ;;  %s936_s20 = sphi %s994_s20, %s1293_s20   ;;  %s932_s19 = sphi %s992_s19, %s1292_s19   ;;  %s928_s18 = sphi %s990_s18, %s1291_s18  }
   0xb   : > { %p39_p0 = scmp.ge.s32.totalorder %s37_s24, 2  ;;  %p85_p1 = scmp.ne.s32.totalorder %s936_s20, %s932_s19 }
   0xc   : > { %p86_p2 = scmp.eq.s32.totalorder %s948_s23, 0  ;;  %p716_p5 = scmp.lt.s32.totalorder %s948_s23, 2 }
   0xd   : > { %s1297_s24 = smov (%p39_p0, %s37_s24), 0  ;;  %s237_s27 = sand.u32 1, %s948_s23  }
   0xe   : > { %p87_p4 = por %p86_p2, %p85_p1  ;;  %s74_s26 = ssub.s32 %s944_s22, %s1297_s24 }
   0xf   : > { %p76_p6 = scmp.eq.s32.totalorder %s74_s26, 0  ;;  %s239_s28 = sand.u32 1, %s936_s20  }
  0x10   : > { %s635_s29 = sshll.u32 %s944_s22, 7  ;;  %s634_s6 = sshll.u32 %s239_s28, 3 }
  0x11   : > { %s1038_s30 = scalar_select %p76_p6, %s936_s20, %s78_s25  }
  0x12   : > { %s1274_s1 = sld [smem:[#allocation12_spill]]  ;;  %p1047_p7 = pnand %p716_p5, %p87_p4 }
  0x13   : > { %s241_s11 = scalar_lea.vmem [#allocation5], %s634_s6  ;;  %s1051_s13 = sshll.u32 %s239_s28, 6 }
  0x14   : > { %s250_s12 = sshll.u32 %s241_s11, 4  ;;  %s1055_s14 = scalar_lea.sflag [#allocation6], %s237_s27  ;;  %s1053_s12 = int_to_ptr.vmem [resolvable:$true] %s250_s12 }
  0x15   : > { %p776_p9 = pneg %p1047_p7 }
  0x18   : > { %s1045_s9 = scalar_lea.hbm %s1274_s1, %s635_s29  ;;  %s779_s25 = scalar_lea.hbm %s1274_s1, 256 }
  0x19   : > { %s774_s15 = scalar_lea.hbm %s1045_s9, 128  ;;  %p780_p12 = scmp.lt.u32.totalorder %s1045_s9, %s1274_s1 }
  0x1a   : > { %p775_p8 = scmp.ne.s32.totalorder %s1045_s9, %s774_s15  ;;  %p781_p13 = scmp.lt.u32.totalorder %s779_s25, %s774_s15 }
  0x1b   : > { %p783_p2 = scmp.lt.u32.totalorder %s774_s15, %s1045_s9 }
  0x1c   : > { %p777_p10 = pnand %p776_p9, %p775_p8  ;;  %p782_p0 = por %p781_p13, %p780_p12 }
  0x1e   : > { %p778_p11 = pneg %p777_p10  ;;  %p784_p4 = por %p783_p2, %p782_p0 }
  0x20   : > { %p785_p5 = pnand %p784_p4, %p778_p11 }
  0x22   : > { %788 = shalt.err (!%p785_p5)
}
  0x23   : > { %s789_s27 = scalar_lea.vmem %s1053_s12, 128  ;;  %s950_s28 = smov [#allocation5]  }
  0x24   : > { %p790_p6 = scmp.ne.s32.totalorder %s1053_s12, %s789_s27  ;;  %s794_s7 = sshll.u32 %s950_s28, 4  ;;  %s795_s7 = int_to_ptr.vmem [resolvable:$false] %s794_s7 }
  0x25   : > { %s796_s8 = scalar_lea.vmem %s795_s7, 256  ;;  %p797_p3 = scmp.lt.s32.totalorder %s1053_s12, %s795_s7 }
  0x26   : > { %p792_p8 = pnand %p790_p6, %p776_p9  ;;  %p798_p12 = scmp.lt.s32.totalorder %s796_s8, %s789_s27 }
  0x28   : > { %p793_p10 = pneg %p792_p8  ;;  %p799_p13 = por %p798_p12, %p797_p3 }
  0x2a   : > { %p800_p0 = pnand %p799_p13, %p793_p10 }
  0x2c   : > { %803 = shalt.err (!%p800_p0)
}
  0x2d   : > { %707 = dma.hbm_to_vmem [thread:$0]  (!%p1047_p7), %s1045_s9, 128, %s1053_s12, %s1055_s14  }
  0x2e   : > { %s1276_s2 = sld [smem:[#allocation13_spill]]  ;;  %s261_s17 = scalar_lea.vmem [#allocation7], %s1051_s13 }
  0x2f   : > { %s270_s25 = sshll.u32 %s261_s17, 4  ;;  %s1092_s26 = sadd.s32 4294967295, %s948_s23   ;;  %s1118_s25 = int_to_ptr.vmem [resolvable:$true] %s270_s25 }
  0x30   : > { %s630_s6 = sadd.s32 4294967294, %s948_s23   ;;  %p91_p3 = scmp.ne.s32.totalorder %s932_s19, %s928_s18 }
  0x31   : > { %p1268_p11 = scmp.eq.s32.totalorder %s1092_s26, 0  ;;  %p197_p2 = scmp.eq.s32.totalorder %s1092_s26, 1 }
  0x32   : > { %p203_p4 = scmp.eq.s32.totalorder %s630_s6, 1  ;;  %p631_p6 = scmp.ge.s32.totalorder %s948_s23, 1 }
  0x33   : > { %p1101_p5 = por %p1268_p11, %p91_p3  ;;  %p1109_p8 = por %p197_p2, %p85_p1 }
  0x34   : > { %s1088_s16 = scalar_lea.hbm %s1276_s2, %s635_s29  ;;  %p1113_p10 = por %p203_p4, %p91_p3 }
  0x35   : > { %s1277_s29 = scalar_select %p1101_p5, 1, 0 }
  0x36   : > { %s1278_s9 = scalar_select %p1109_p8, 1, 0 }
  0x37   : > { %s1279_s12 = scalar_select %p1113_p10, 1, 0 }
  0x38   : > { %p210_p12 = scmp.lt.s32.totalorder %s948_s23, 3  ;;  %s951_s27 = smov [#allocation2]  }
  0x39   : > { %s1124_s28 = sshll.u32 %s951_s27, 4  ;;  %s804_s7 = scalar_lea.hbm %s1088_s16, 1024  ;;  %s227_s28 = int_to_ptr.vmem [resolvable:$true] %s1124_s28 }
  0x3a   : > { %p1120_p13 = pnand %p631_p6, %p210_p12  ;;  %p805_p0 = scmp.ne.s32.totalorder %s1088_s16, %s804_s7 }
  0x3b   : > { %s809_s15 = scalar_lea.hbm %s1276_s2, 2048  ;;  %p810_p4 = scmp.lt.u32.totalorder %s1088_s16, %s1276_s2 }
  0x3c   : > { %s1280_s13 = scalar_select %p1120_p13, 1, 0 }
  0x3d   : > { %p807_p3 = pnand %p805_p0, %p776_p9  ;;  %p811_p6 = scmp.lt.u32.totalorder %s809_s15, %s804_s7 }
  0x3e   : > { %p813_p11 = scmp.lt.u32.totalorder %s804_s7, %s1088_s16 }
  0x3f   : > { %p808_p2 = pneg %p807_p3  ;;  %p812_p12 = por %p811_p6, %p810_p4 }
  0x41   : > { %p814_p10 = por %p813_p11, %p812_p12 }
  0x43   : > { %p815_p8 = pnand %p814_p10, %p808_p2 }
  0x45   : > { %818 = shalt.err (!%p815_p8)
}
  0x46   : > { %s819_s27 = scalar_lea.vmem %s1118_s25, 1024  ;;  %s952_s8 = smov [#allocation7]  }
  0x47   : > { %p820_p0 = scmp.ne.s32.totalorder %s1118_s25, %s819_s27  ;;  %s824_s11 = sshll.u32 %s952_s8, 4  ;;  %s825_s11 = int_to_ptr.vmem [resolvable:$false] %s824_s11 }
  0x48   : > { %s826_s17 = scalar_lea.vmem %s825_s11, 2048  ;;  %p827_p5 = scmp.lt.s32.totalorder %s1118_s25, %s825_s11 }
  0x49   : > { %p822_p3 = pnand %p820_p0, %p776_p9  ;;  %p828_p4 = scmp.lt.s32.totalorder %s826_s17, %s819_s27 }
  0x4b   : > { %p823_p1 = pneg %p822_p3  ;;  %p829_p6 = por %p828_p4, %p827_p5 }
  0x4d   : > { %p830_p11 = pnand %p829_p6, %p823_p1 }
  0x4f   : > { %833 = shalt.err (!%p830_p11)
}
  0x50   : > { %s953_s7 = smov 256   ;;  %s954_s15 = smov 128  }
  0x51   : > { %s955_s6 = smov 8   ;;  %p1281_p9 = scmp.eq.s32.totalorder %s1092_s26, 0 }
  0x52   : > { %710 = dma.hbm_to_vmem [thread:$0]  (!%p1047_p7), %s1088_s16, 1024, %s1118_s25, %s1055_s14, %s953_s7, %s954_s15, %s955_s6  }
  0x53   : > { %p1282_p8 = pneg %p1120_p13  ;;  %s834_s17 = scalar_lea.hbm %s1262_s0, 128 }
  0x54   : > { %p835_p5 = scmp.ne.s32.totalorder %s1262_s0, %s834_s17  ;;  %p841_p12 = scmp.lt.u32.totalorder %s834_s17, %s1262_s0 }
  0x55   : > { %p1158_p10 = pnand %p1282_p8, %p1281_p9 }
  0x57   : > { %p836_p1 = pneg %p1158_p10 }
  0x59   : > { %p837_p7 = pnand %p836_p1, %p835_p5 }
  0x5b   : > { %p838_p2 = pneg %p837_p7 }
  0x5d   : > { %p843_p0 = pnand %p841_p12, %p838_p2 }
  0x5f   : > { %846 = shalt.err (!%p843_p0)
}
  0x60   : > { %s847_s16 = scalar_lea.vmem %s227_s28, 128  ;;  %p855_p11 = scmp.lt.s32.totalorder %s227_s28, %s227_s28 }
  0x61   : > { %p848_p3 = scmp.ne.s32.totalorder %s227_s28, %s847_s16  ;;  %p856_p9 = scmp.lt.s32.totalorder %s847_s16, %s847_s16 }
  0x63   : > { %p850_p4 = pnand %p848_p3, %p836_p1  ;;  %p857_p8 = por %p856_p9, %p855_p11 }
  0x65   : > { %p851_p6 = pneg %p850_p4 }
  0x67   : > { %p858_p13 = pnand %p857_p8, %p851_p6 }
  0x69   : > { %861 = shalt.err (!%p858_p13)
}
  0x6a   : > { %703 = dma.hbm_to_vmem [thread:$0]  (!%p1158_p10), %s1262_s0, 128, %s227_s28, [#allocation3]  }
  0x6b   : > { %p1284_p5 = scmp.ne.s32.totalorder %s1280_s13, 0 }
  0x6c   : > { %p1285_p7 = scmp.eq.s32.totalorder (!%p1284_p5), %s1092_s26, 0 }
  0x6d   : > { %294 = sbr.rel (%p1284_p5) target bundleno = 374 (0x176), region = 40 }
  0x74   : > { %915 = dma.done.wait (%p1285_p7), [#allocation3], 128   ;;  %p1286_p1 = pmov %p1285_p7 }
  0x75   : > { %s300_s25 = sand.u32 1, %s1092_s26   ;;  %s1186_s7 = sand.u32 1, %s932_s19  }
  0x76   : > { %917 = vsyncadd (%p1286_p1), [#allocation3], 4294967168  ;;  %s640_s15 = sshll.u32 %s1186_s7, 3  ;;  %s301_s6 = scalar_lea.sflag [#allocation6], %s300_s25 }
  0x77   : > { %s1191_s28 = scalar_lea.vmem [#allocation5], %s640_s15  ;;  %p1287_p13 = scmp.ne.s32.totalorder %s1277_s29, 0 }
  0x79   : > { %919 = dma.done.wait (%p1287_p13), %s301_s6, 1152  }
  0x7a   : > { %921 = vsyncadd (%p1287_p13), %s301_s6, 4294966144  ;;  %v956_v0 = vmov 0.0|0.0   ;;  %s641_s13 = sshll.u32 %s1186_s7, 6  ;;  %vm957_vm0 = vmmov 0   ;;  %v958_v1 = vmov 0.0   ;;  %v364_v14 = vld [vmem:[#allocation2] sm:$0xff] }
  0x7b   : > { %678 = vmatprep.subr.bf16.mxu0 %v956_v0  ;;  %675 = vmatprep.mubr.msk.f32.mxu0 %vm957_vm0, %v958_v1  ;;  %s313_s26 = scalar_lea.vmem [#allocation7], %s641_s13  ;;  %vm373_vm1 = vcmask 523264   ;;  %p352_p10 = scmp.lt.s32.totalorder %s940_s21, 1  ;;  %v454_v16 = vld [vmem:[%s1191_s28] sm:$0xff] }
  0x7c   : > { %v365_v2 = vld [vmem:[%s313_s26] sm:$0xff]  ;;  %v366_v3 = vld [vmem:[%s313_s26 + $0x8] sm:$0xff]  ;;  %v367_v4 = vld [vmem:[%s313_s26 + $0x10] sm:$0xff]  ;;  %s647_s16 = sshll.u32 %s940_s21, 7  ;;  %s350_s1 = scalar_lea.vmem [#allocation8], %s640_s15 }
  0x7d   : > { %v679_v5 = vpack.c.bf16 %v366_v3, %v365_v2  ;;  %v368_v6 = vld [vmem:[%s313_s26 + $0x18] sm:$0xff]  ;;  %v369_v8 = vld [vmem:[%s313_s26 + $0x20] sm:$0xff]  ;;  %v370_v9 = vld [vmem:[%s313_s26 + $0x28] sm:$0xff]  ;;  %s353_s29 = scalar_select %p352_p10, %s940_s21, 1 }
  0x7e   : > { %v682_v7 = vpack.c.bf16 %v368_v6, %v367_v4  ;;  %v685_v10 = vpack.c.bf16 %v370_v9, %v369_v8  ;;  %v371_v11 = vld [vmem:[%s313_s26 + $0x30] sm:$0xff]  ;;  %v372_v12 = vld [vmem:[%s313_s26 + $0x38] sm:$0xff]  ;;  %s489_s2 = sshll.u32 %s350_s1, 4  ;;  %s1213_s28 = scalar_lea.hbm %s1267_s5, %s647_s16  ;;  %s1215_s2 = int_to_ptr.vmem [resolvable:$true] %s489_s2 }
  0x7f   : > { %680 = vmatpush3.bf16.msra.mxu0 %v679_v5  ;;  %v688_v13 = vpack.c.bf16 %v372_v12, %v371_v11  ;;  %s354_s11 = scalar_lea.vmem %s1265_s3, %s353_s29  ;;  %s357_s14 = scalar_lea.vmem %s1266_s4, %s353_s29 }
  0x80   : > { %681 = vmatprep.subr.bf16.mxu0 %v956_v0  ;;  %v644_v15 = vld [vmem:[%s354_s11] ss:$0 sm:$0xff]  ;;  %s474_s13 = scalar_lea.sflag [#allocation4], %s1186_s7  ;;  %s862_s26 = scalar_lea.vmem %s1215_s2, 128 }
  0x81   : > { %v461_v17 = vmul.f32 %v644_v15, %v454_v16  ;;  %v645_v20 = vld [vmem:[%s357_s14] ss:$0 sm:$0xff]  ;;  %p863_p2 = scmp.ne.s32.totalorder %s1215_s2, %s862_s26  ;;  %p1288_p12 = scmp.ne.s32.totalorder %s1278_s9, 0 }
  0x82   : > { %s959_s21 = smov [#allocation8]  }
  0x83   : > { %683 = vmatpush3.bf16.msra.mxu0 %v682_v7  ;;  %p864_p0 = pnand %p863_p2, %p1288_p12  ;;  %s866_s15 = sshll.u32 %s959_s21, 4  ;;  %s867_s15 = int_to_ptr.vmem [resolvable:$false] %s866_s15 }
  0x84   : > { %684 = vmatprep.subr.bf16.mxu0 %v956_v0  ;;  %s868_s29 = scalar_lea.vmem %s867_s15, 256  ;;  %p869_p4 = scmp.lt.s32.totalorder %s1215_s2, %s867_s15 }
  0x85   : > { %p865_p3 = pneg %p864_p0  ;;  %p870_p6 = scmp.lt.s32.totalorder %s868_s29, %s862_s26 }
  0x87   : > { %686 = vmatpush3.bf16.msra.mxu0 %v685_v10  ;;  %p871_p11 = por %p870_p6, %p869_p4 }
  0x88   : > { %687 = vmatprep.subr.bf16.mxu0 %v956_v0 }
  0x89   : > { %p872_p9 = pnand %p871_p11, %p865_p3 }
  0x8b   : > { %689 = vmatpush3.bf16.msra.mxu0 %v688_v13 }
  0x8e   : > { %676 = vmatmul.mubr.msk.f32.vlgmr.msra.gmra.mrb[0].mxu0 %vm373_vm1, %v364_v14 }
 0x161   : > { %v443_v18 = vpop.f32.mrb[0].mxu0 }
 0x162   : > { %v677_v19 = vpop.f32.mrb[1].mxu0  ;;  %v462_v21 = vadd.f32 %v461_v17, %v443_v18 }
 0x164   : > { %v470_v22 = vadd.f32 %v645_v20, %v462_v21 }
 0x166   : > { %v471_v23 = vmax.f32 %v470_v22, 0.0 }
 0x168   : > { %472 = vst [vmem:[%s350_s1] sm:$0xff] %v471_v23 }
 0x169   : > { %875 = shalt.err (!%p872_p9)
}
 0x16a   : > { %s876_s7 = scalar_lea.hbm %s1213_s28, 128  ;;  %s880_s11 = scalar_lea.hbm %s1267_s5, 256 }
 0x16b   : > { %p877_p8 = scmp.ne.s32.totalorder %s1213_s28, %s876_s7  ;;  %p881_p1 = scmp.lt.u32.totalorder %s1213_s28, %s1267_s5 }
 0x16c   : > { %p882_p13 = scmp.lt.u32.totalorder %s880_s11, %s876_s7  ;;  %p884_p2 = scmp.lt.u32.totalorder %s876_s7, %s1213_s28 }
 0x16d   : > { %p878_p5 = pnand %p877_p8, %p1288_p12 }
 0x16e   : > { %p883_p10 = por %p882_p13, %p881_p1 }
 0x16f   : > { %p879_p7 = pneg %p878_p5 }
 0x170   : > { %p885_p0 = por %p884_p2, %p883_p10 }
 0x172   : > { %p886_p3 = pnand %p885_p0, %p879_p7 }
 0x174   : > { %889 = shalt.err (!%p886_p3)
}
 0x175   : > { %698 = dma.vmem_to_hbm [thread:$0]  (%p1288_p12), %s1215_s2, 128, %s1213_s28, %s474_s13  }
 0x176 PF: > { %s501_s14 = sand.u32 1, %s928_s18   ;;  %p1289_p4 = scmp.ne.s32.totalorder %s1279_s12, 0 }
 0x177   : > { %p1290_p6 = scmp.ge.s32.totalorder %s948_s23, 2  ;;  %s502_s16 = scalar_lea.sflag [#allocation4], %s501_s14 }
 0x179   : > { %p712_p11 = pnand %p1290_p6, %p1289_p4 }
 0x17b   : > { %923 = dma.done.wait (!%p712_p11), %s502_s16, 128  }
 0x17c   : > { %925 = vsyncadd (!%p712_p11), %s502_s16, 4294967168  ;;  %s22_s23 = sadd.s32 1, %s948_s23   ;;  %s1291_s18 = smov %s932_s19 }
 0x17d   : > { %p19_p9 = scmp.ge.s32.totalorder %s22_s23, 4   ;;  %s1292_s19 = smov %s936_s20 }
 0x17e   : > { %s1293_s20 = smov %s1038_s30  ;;  %s1294_s21 = smov %s944_s22 }
 0x17f   : > { %s1295_s22 = smov %s1297_s24  ;;  %21 = sbr.rel (!%p19_p9) target bundleno = 10 (0xa), region = 116 }
 0x186   :  { %507 = vsyncpa [#allocation3], 1 }
 0x187   :  { %509 = vsyncpa [#allocation3 + $0x1], 1 }
 0x188   :  { %510 = vsyncpa [#allocation6], 1 }
 0x189   :  { %512 = vsyncpa [#allocation6 + $0x1], 1 }
 0x18a   :  { %513 = vsyncpa [#allocation4], 1 }
 0x18b   :  { %515 = vsyncpa [#allocation4 + $0x1], 1 }

</bundles_post_ra>
